<compile_context>
chip_gen: v7x
topology: tpu7x:2x2x1
jax: 0.10.0
libtpu: 0.0.40
codegen_flags: <defaults>
</compile_context>

<pallas_src>
import functools

import jax
import jax.numpy as jnp
from jax.experimental import pallas as pl
from jax.experimental.pallas import tpu as pltpu


# Explicit VMEM limit: safe on every generation (v7x has 64 MiB physical).
_VMEM_LIMIT_BYTES = 64 * 1024 * 1024
# Row-tile sizing budget (inputs x 2 pipeline buffers + f32 temporaries) —
# kept well below the limit so nothing spills.
_TILE_BUDGET_BYTES = 32 * 1024 * 1024


def _choose_block_rows(n, c, in_itemsize):
    """Largest row tile (multiple of 8 sublanes) that fits the VMEM budget."""
    # Per row: 2 inputs x 2 pipeline buffers x itemsize + ~5 f32 full-tile temps.
    per_row_bytes = c * (4 * in_itemsize + 5 * 4)
    tm = _TILE_BUDGET_BYTES // max(per_row_bytes, 1)
    tm = max(8, min(tm, n))
    return (tm + 7) // 8 * 8


def _make_kl_kernel(temperature, n_rows, block_rows):
    inv_t = 1.0 / float(temperature)

    def kernel(logits_ref, teacher_ref, o_ref):
        # (TM, C) tiles; cast to f32 in-kernel so callers can pass bf16.
        s = logits_ref[...].astype(jnp.float32)
        t = teacher_ref[...].astype(jnp.float32) * inv_t

        # Student log-sum-exp per row (stable two-pass).
        s_shift = s - jnp.max(s, axis=-1, keepdims=True)
        s_lse = jnp.log(jnp.sum(jnp.exp(s_shift), axis=-1, keepdims=True))

        # Teacher: one exp, reused for both the LSE and the softmax probs.
        t_shift = t - jnp.max(t, axis=-1, keepdims=True)
        exp_t = jnp.exp(t_shift)
        t_sum = jnp.sum(exp_t, axis=-1, keepdims=True)
        p = exp_t / t_sum  # exact divide (approx reciprocal would break 1e-5 tol)

        # (t_ls - s_ls) == (t_shift - s_shift) + (s_lse - log t_sum); the logs
        # are per-row (TM,1) scalars, so no third full-tile transcendental.
        log_ratio = (t_shift - s_shift) + (s_lse - jnp.log(t_sum))

        # Per-row KL partial sums for this block.
        kl_rows = jnp.sum(p * log_ratio, axis=-1, keepdims=True)  # (TM, 1)

        # Mask rows past the true batch size (last partial block reads garbage).
        row = pl.program_id(0) * block_rows + jax.lax.broadcasted_iota(
            jnp.int32, (block_rows, 1), 0
        )
        o_ref[...] = jnp.where(row < n_rows, kl_rows, 0.0)

    return kernel


@functools.partial(jax.jit, static_argnames=("T", "block_rows"))
def feedback_distillation_loss(logits, labels, teacher_logits, T=1.0, block_rows=None):
    """JAX/Pallas equivalent of FeedBackDistillationLoss.forward."""
    del labels  # unused in the PyTorch forward as well
    n, c = logits.shape

    in_itemsize = max(
        jnp.dtype(logits.dtype).itemsize, jnp.dtype(teacher_logits.dtype).itemsize
    )
    tm = block_rows if block_rows is not None else _choose_block_rows(n, c, in_itemsize)
    tm = (int(tm) + 7) // 8 * 8
    num_blocks = pl.cdiv(n, tm)

    kernel = _make_kl_kernel(T, n, tm)

    bytes_accessed = n * c * (
        jnp.dtype(logits.dtype).itemsize + jnp.dtype(teacher_logits.dtype).itemsize
    ) + num_blocks * tm * 4

    per_row_kl = pl.pallas_call(
        kernel,
        out_shape=jax.ShapeDtypeStruct((num_blocks * tm, 1), jnp.float32),
        grid=(num_blocks,),
        in_specs=[
            pl.BlockSpec((tm, c), lambda i: (i, 0)),
            pl.BlockSpec((tm, c), lambda i: (i, 0)),
        ],
        out_specs=pl.BlockSpec((tm, 1), lambda i: (i, 0)),
        compiler_params=pltpu.CompilerParams(
            dimension_semantics=("parallel",),  # independent row blocks -> megacore OK
            vmem_limit_bytes=_VMEM_LIMIT_BYTES,
        ),
        cost_estimate=pl.CostEstimate(
            flops=12 * n * c,
            transcendentals=2 * n * c,
            bytes_accessed=bytes_accessed,
        ),
    )(logits, teacher_logits)

    # Tiny final reduction + 'batchmean' divide in the wrapper (free).
    return jnp.sum(per_row_kl) / n


def _reference(logits, teacher_logits, T=1.0):
    t = jax.nn.log_softmax(teacher_logits.astype(jnp.float32) / T, axis=-1)
    s = jax.nn.log_softmax(logits.astype(jnp.float32), axis=-1)
    return jnp.sum(jnp.exp(t) * (t - s)) / logits.shape[0]


if __name__ == "__main__":
    key = jax.random.PRNGKey(0)
    k1, k2, k3, k4, k5 = jax.random.split(key, 5)

    # --- Test 1: small shape matching the module's typical use (single block) ---
    batch, num_classes = 8, 32
    logits = jax.random.normal(k1, (batch, num_classes), dtype=jnp.float32)
    teacher_logits = jax.random.normal(k2, (batch, num_classes), dtype=jnp.float32)
    labels = jax.random.randint(k3, (batch,), 0, num_classes)  # unused, mirrors API

    loss = feedback_distillation_loss(logits, labels, teacher_logits, T=1.0)
    loss = jax.block_until_ready(loss)
    ref = _reference(logits, teacher_logits, T=1.0)
    assert jnp.allclose(loss, ref, atol=1e-5, rtol=1e-5), (loss, ref)

    # --- Test 2: multi-block grid + partial last block + temperature ---
    n2, c2 = 40, 160  # 40 rows with block_rows=16 -> grid of 3, last block masked
    logits2 = jax.random.normal(k4, (n2, c2), dtype=jnp.float32)
    teacher2 = jax.random.normal(k5, (n2, c2), dtype=jnp.float32)
    labels2 = jnp.zeros((n2,), dtype=jnp.int32)

    loss2 = feedback_distillation_loss(logits2, labels2, teacher2, T=2.0, block_rows=16)
    loss2 = jax.block_until_ready(loss2)
    ref2 = _reference(logits2, teacher2, T=2.0)
    assert jnp.allclose(loss2, ref2, atol=1e-5, rtol=1e-5), (loss2, ref2)

    # --- Test 3: bf16 inputs (halved HBM traffic path), loose tolerance ---
    loss3 = feedback_distillation_loss(
        logits2.astype(jnp.bfloat16), labels2, teacher2.astype(jnp.bfloat16), T=2.0
    )
    loss3 = jax.block_until_ready(loss3)
    assert jnp.allclose(loss3, ref2, atol=5e-2, rtol=5e-2), (loss3, ref2)

    print("KERNEL_OK")
</pallas_src>

<mosaic_0001>
module attributes {stable_mosaic.version = 11 : i64} {
  func.func @kernel(%arg0: i32, %arg1: memref<8x32xf32, #tpu.memory_space<vmem>>, %arg2: memref<8x32xf32, #tpu.memory_space<vmem>>, %arg3: memref<8x1xf32, #tpu.memory_space<vmem>>) attributes {dimension_semantics = [#tpu.dimension_semantics<parallel>], iteration_bounds = array<i64: 1>, scalar_prefetch = 0 : i64, scratch_operands = 0 : i64, tpu.core_type = #tpu.core_type<tc>, window_params = [{transform_indices = @transform_0, window_bounds = array<i64: 8, 32>}, {transform_indices = @transform_1, window_bounds = array<i64: 8, 32>}, {transform_indices = @transform_2, window_bounds = array<i64: 8, 1>}]} {
    %c0 = arith.constant 0 : index
    %c0_0 = arith.constant 0 : index
    %0 = vector.load %arg1[%c0, %c0_0] : memref<8x32xf32, #tpu.memory_space<vmem>>, vector<8x32xf32>
    %c0_1 = arith.constant 0 : index
    %c0_2 = arith.constant 0 : index
    %1 = vector.load %arg2[%c0_1, %c0_2] : memref<8x32xf32, #tpu.memory_space<vmem>>, vector<8x32xf32>
    %cst = arith.constant 1.000000e+00 : f32
    %2 = vector.broadcast %cst : f32 to vector<8x32xf32>
    %3 = arith.mulf %1, %2 : vector<8x32xf32>
    %cst_3 = arith.constant dense<0xFF800000> : vector<8xf32>
    %4 = vector.multi_reduction <maximumf>, %0, %cst_3 [1] : vector<8x32xf32> to vector<8xf32>
    %5 = vector.shape_cast %4 : vector<8xf32> to vector<8x1xf32>
    %6 = vector.broadcast %5 : vector<8x1xf32> to vector<8x32xf32>
    %7 = arith.subf %0, %6 : vector<8x32xf32>
    %8 = math.exp %7 : vector<8x32xf32>
    %cst_4 = arith.constant dense<0.000000e+00> : vector<8xf32>
    %9 = vector.multi_reduction <add>, %8, %cst_4 [1] : vector<8x32xf32> to vector<8xf32>
    %10 = vector.shape_cast %9 : vector<8xf32> to vector<8x1xf32>
    %11 = math.log %10 : vector<8x1xf32>
    %cst_5 = arith.constant dense<0xFF800000> : vector<8xf32>
    %12 = vector.multi_reduction <maximumf>, %3, %cst_5 [1] : vector<8x32xf32> to vector<8xf32>
    %13 = vector.shape_cast %12 : vector<8xf32> to vector<8x1xf32>
    %14 = vector.broadcast %13 : vector<8x1xf32> to vector<8x32xf32>
    %15 = arith.subf %3, %14 : vector<8x32xf32>
    %16 = math.exp %15 : vector<8x32xf32>
    %cst_6 = arith.constant dense<0.000000e+00> : vector<8xf32>
    %17 = vector.multi_reduction <add>, %16, %cst_6 [1] : vector<8x32xf32> to vector<8xf32>
    %18 = vector.shape_cast %17 : vector<8xf32> to vector<8x1xf32>
    %19 = vector.broadcast %18 : vector<8x1xf32> to vector<8x32xf32>
    %20 = arith.divf %16, %19 : vector<8x32xf32>
    %21 = arith.subf %15, %7 : vector<8x32xf32>
    %22 = math.log %18 : vector<8x1xf32>
    %23 = arith.subf %11, %22 : vector<8x1xf32>
    %24 = vector.broadcast %23 : vector<8x1xf32> to vector<8x32xf32>
    %25 = arith.addf %21, %24 : vector<8x32xf32>
    %26 = arith.mulf %20, %25 : vector<8x32xf32>
    %cst_7 = arith.constant dense<0.000000e+00> : vector<8xf32>
    %27 = vector.multi_reduction <add>, %26, %cst_7 [1] : vector<8x32xf32> to vector<8xf32>
    %28 = vector.shape_cast %27 : vector<8xf32> to vector<8x1xf32>
    %c8_i32 = arith.constant 8 : i32
    %29 = arith.muli %arg0, %c8_i32 : i32
    %30 = tpu.iota {dimensions = array<i32: 0>} : vector<8x1xi32>
    %31 = vector.broadcast %29 : i32 to vector<8x1xi32>
    %32 = arith.addi %31, %30 : vector<8x1xi32>
    %c8_i32_8 = arith.constant 8 : i32
    %33 = vector.broadcast %c8_i32_8 : i32 to vector<8x1xi32>
    %34 = arith.cmpi slt, %32, %33 : vector<8x1xi32>
    %cst_9 = arith.constant 0.000000e+00 : f32
    %35 = vector.broadcast %cst_9 : f32 to vector<8x1xf32>
    %36 = arith.select %34, %28, %35 : vector<8x1xi1>, vector<8x1xf32>
    %c0_10 = arith.constant 0 : index
    %c0_11 = arith.constant 0 : index
    %37 = vector.load %arg3[%c0_10, %c0_11] : memref<8x1xf32, #tpu.memory_space<vmem>>, vector<8x1xf32>
    tpu.vector_store %arg3[%c0_10, %c0_11], %36 {strides = array<i32>} : memref<8x1xf32, #tpu.memory_space<vmem>>, vector<8x1xf32>,
    return
  }
  func.func @transform_0(%arg0: i32) -> (i32, i32) {
    %c0_i32 = arith.constant 0 : i32
    %c0_i32_0 = arith.constant 0 : i32
    return %arg0, %c0_i32 : i32, i32
  }
  func.func @transform_1(%arg0: i32) -> (i32, i32) {
    %c0_i32 = arith.constant 0 : i32
    %c0_i32_0 = arith.constant 0 : i32
    return %arg0, %c0_i32 : i32, i32
  }
  func.func @transform_2(%arg0: i32) -> (i32, i32) {
    %c0_i32 = arith.constant 0 : i32
    %c0_i32_0 = arith.constant 0 : i32
    return %arg0, %c0_i32 : i32, i32
  }
}

</mosaic_0001>

<bundles_post_ra>
// kernel: feedback_distillation_loss.1
= control target key start
LH: loop header
LB: loop body
LE: loop exit
PB: predicated region body
PF: predicated region fallthrough
CT: control target
= control target key end

     0   :  { %7 = vsyncpa [#allocation3], 0  ;;  %s239_s0 = inlined_call_operand.hbm [shape: f32[8,32], index: 0, kind: input, shape index: {}]   ;;  %s240_s1 = inlined_call_operand.hbm [shape: f32[8,32], index: 1, kind: input, shape index: {}]   ;;  %s241_s2 = inlined_call_operand.hbm [shape: f32[8,1], index: 2, kind: output, shape index: {}]  }
   0x1   :  { %8 = vsyncpa [#allocation6], 0 }
   0x2   :  { %9 = vsyncpa [#allocation4], 0  ;;  %s180_s9 = smov [#allocation2]   ;;  %s181_s11 = smov [#allocation5]  }
   0x3   :  { %s16_s10 = sshll.u32 %s180_s9, 4  ;;  %s26_s12 = sshll.u32 %s181_s11, 4  ;;  %s17_s10 = int_to_ptr.vmem [resolvable:$true] %s16_s10  ;;  %s27_s12 = int_to_ptr.vmem [resolvable:$true] %s26_s12 }
   0x4   :  { %s108_s15 = scalar_lea.hbm %s239_s0, 128 }
   0x5   :  { %p109_p0 = scmp.ne.s32.totalorder %s239_s0, %s108_s15  ;;  %p112_p1 = scmp.lt.u32.totalorder %s108_s15, %s239_s0 }
   0x7   :  { %p114_p2 = pnand %p112_p1, %p109_p0 }
   0x9   :  { %117 = shalt.err (!%p114_p2)
}
   0xa   :  { %s118_s20 = scalar_lea.vmem %s17_s10, 128  ;;  %p123_p4 = scmp.lt.s32.totalorder %s17_s10, %s17_s10 }
   0xb   :  { %p119_p3 = scmp.ne.s32.totalorder %s17_s10, %s118_s20  ;;  %p124_p5 = scmp.lt.s32.totalorder %s118_s20, %s118_s20 }
   0xd   :  { %p125_p6 = por %p124_p5, %p123_p4 }
   0xf   :  { %p126_p7 = pnand %p125_p6, %p119_p3 }
  0x11   :  { %129 = shalt.err (!%p126_p7)
}
  0x12   :  { %19 = dma.hbm_to_vmem [thread:$0]  %s239_s0, 128, %s17_s10, [#allocation3]  }
  0x13   :  { %s130_s25 = scalar_lea.hbm %s240_s1, 128 }
  0x14   :  { %p131_p8 = scmp.ne.s32.totalorder %s240_s1, %s130_s25  ;;  %p134_p9 = scmp.lt.u32.totalorder %s130_s25, %s240_s1 }
  0x16   :  { %p136_p10 = pnand %p134_p9, %p131_p8 }
  0x18   :  { %139 = shalt.err (!%p136_p10)
}
  0x19   :  { %s140_s30 = scalar_lea.vmem %s27_s12, 128  ;;  %p145_p12 = scmp.lt.s32.totalorder %s27_s12, %s27_s12 }
  0x1a   :  { %p141_p11 = scmp.ne.s32.totalorder %s27_s12, %s140_s30  ;;  %p146_p13 = scmp.lt.s32.totalorder %s140_s30, %s140_s30 }
  0x1c   :  { %p147_p0 = por %p146_p13, %p145_p12 }
  0x1e   :  { %p148_p1 = pnand %p147_p0, %p141_p11 }
  0x20   :  { %151 = shalt.err (!%p148_p1)
}
  0x21   :  { %29 = dma.hbm_to_vmem [thread:$0]  %s240_s1, 128, %s27_s12, [#allocation6]  }
  0x22   :  { %174 = dma.done.wait [#allocation3], 128  }
  0x23   :  { %175 = vsyncadd [#allocation3], 4294967168 }
  0x24   :  { %176 = dma.done.wait [#allocation6], 128  }
  0x25   :  { %177 = vsyncadd [#allocation6], 4294967168  ;;  %vm38_vm0 = vcmask 261120   ;;  %v36_v0 = vld [vmem:[#allocation2] sm:$0xff]  ;;  %v37_v1 = vld [vmem:[#allocation5] sm:$0xff]  ;;  %s182_s1 = smov [#allocation7]  }
  0x26   :  { %v39_v2 = vsel %vm38_vm0, %v36_v0, -inf  ;;  %v50_v3 = vsel %vm38_vm0, %v37_v1, -inf  ;;  %s85_s4 = sshll.u32 %s182_s1, 4  ;;  %vm77_vm1 = vcmask 7168   ;;  %s86_s4 = int_to_ptr.vmem [resolvable:$true] %s85_s4 }
  0x27   :  { %40 = vmax.xlane.f32.xlu0 %v39_v2  ;;  %s152_s5 = scalar_lea.vmem %s86_s4, 128  ;;  %p157_p3 = scmp.lt.s32.totalorder %s86_s4, %s86_s4 }
  0x28   :  { %p153_p2 = scmp.ne.s32.totalorder %s86_s4, %s152_s5  ;;  %p158_p4 = scmp.lt.s32.totalorder %s152_s5, %s152_s5 }
  0x2a   :  { %p159_p5 = por %p158_p4, %p157_p3 }
  0x2b   :  { %51 = vmax.xlane.f32.xlu0 %v50_v3 }
  0x2c   :  { %p160_p6 = pnand %p159_p5, %p153_p2 }
  0xb4   :  { %v41_v4 = vpop.xlane.xlu0 %40 }
  0xb5   :  { %v42_v5 = vsub.f32 %v36_v0, %v41_v4 }
  0xb7   :  { %v43_v6 = vmul.f32 1.442695, %v42_v5 }
  0xb8   :  { %v52_v7 = vpop.xlane.xlu0 %51 }
  0xb9   :  { %98 = vpow2.f32 %v43_v6  ;;  %v53_v8 = vsub.f32 %v37_v1, %v52_v7 }
  0xbb   :  { %v54_v9 = vmul.f32 1.442695, %v53_v8  ;;  %v61_v10 = vsub.f32 %v53_v8, %v42_v5 }
  0xbd   :  { %100 = vpow2.f32 %v54_v9 }
  0xc3   :  { %v99_v11 = vpop.eup %98 }
  0xc4   :  { %v45_v12 = vsel %vm38_vm0, %v99_v11, 0.0 }
  0xc5   :  { %46 = vadd.xlane.f32.xlu1 %v45_v12 }
  0xc7   :  { %v101_v13 = vpop.eup %100 }
  0xc8   :  { %v56_v14 = vsel %vm38_vm0, %v101_v13, 0.0 }
  0xc9   :  { %57 = vadd.xlane.f32.xlu1 %v56_v14 }
 0x152   :  { %v47_v15 = vpop.xlane.xlu1 %46 }
 0x153   :  { %102 = vlog2.f32 %v47_v15 }
 0x156   :  { %v58_v16 = vpop.xlane.xlu1 %57 }
 0x157   :  { %104 = vlog2.f32 %v58_v16 }
 0x158   :  { %106 = vrcp.f32 %v58_v16 }
 0x15d   :  { %v103_v17 = vpop.eup %102 }
 0x15e   :  { %v49_v19 = vmul.f32 0.6931472, %v103_v17 }
 0x161   :  { %v105_v18 = vpop.eup %104 }
 0x162   :  { %v63_v20 = vmul.f32 0.6931472, %v105_v18  ;;  %v107_v21 = vpop.eup %106 }
 0x163   :  { %v60_v23 = vmul.f32 %v107_v21, %v101_v13 }
 0x164   :  { %v64_v22 = vsub.f32 %v49_v19, %v63_v20 }
 0x166   :  { %v65_v24 = vadd.f32 %v64_v22, %v61_v10 }
 0x168   :  { %v66_v25 = vmul.f32 %v65_v24, %v60_v23 }
 0x16a   :  { %v67_v26 = vsel %vm38_vm0, %v66_v25, 0.0 }
 0x16b   :  { %68 = vadd.xlane.f32.xlu0 %v67_v26 }
 0x1f8   :  { %v69_v27 = vpop.xlane.xlu0 %68 }
 0x1f9   :  { %78 = vst.msk [vmem:[#allocation7] sm:$0xff] %vm77_vm1, %v69_v27 }
 0x1fa   :  { %163 = shalt.err (!%p160_p6)
}
 0x1fb   :  { %s164_s8 = scalar_lea.hbm %s241_s2, 128 }
 0x1fc   :  { %p165_p7 = scmp.ne.s32.totalorder %s241_s2, %s164_s8  ;;  %p168_p8 = scmp.lt.u32.totalorder %s164_s8, %s241_s2 }
 0x1fe   :  { %p170_p9 = pnand %p168_p8, %p165_p7 }
 0x200   :  { %173 = shalt.err (!%p170_p9)
}
 0x201   :  { %88 = dma.vmem_to_hbm [thread:$0]  %s86_s4, 128, %s241_s2, [#allocation4]  }
 0x202   :  { %178 = dma.done.wait [#allocation4], 128  }
 0x203   :  { %179 = vsyncadd [#allocation4], 4294967168 }
 0x204   :  { %92 = vsyncpa [#allocation3], 1 }
 0x205   :  { %93 = vsyncpa [#allocation6], 1 }
 0x206   :  { %94 = vsyncpa [#allocation4], 1 }

</bundles_post_ra>
